<compile_context>
chip_gen: v5e
topology: v5e:2x2
jax: 0.10.0
libtpu: 0.0.40
codegen_flags: <defaults>
</compile_context>

<pallas_src>
import numpy as np
import jax
import jax.numpy as jnp
from jax.experimental import pallas as pl
from jax.experimental.pallas import tpu as pltpu

EPS = 1e-5
IN_HALF = 256        # each of x_conj / x_state
HIDDEN = 256         # HL1
OUT_DIM = 2          # HL2
OUT_PAD = 128        # fc2 weight padded to a full lane width for the MXU
FUSED_MAX_ROWS = 2048  # h (and the epilogue temporaries) must fit in VMEM


def _round_up(x, m):
    return (x + m - 1) // m * m


# ------------------------------ fused kernel --------------------------------

def _make_fused_kernel(row_tile, n_tiles, n_valid, b_pad):
    """fc1 (split weights, no concat) streamed over row tiles into a VMEM
    scratch; on the last tile: BatchNorm (train-mode, biased var) + ReLU + fc2
    and the narrow (b_pad, 2) output store."""
    has_pad = (b_pad != n_valid)
    inv_n = 1.0 / float(n_valid)

    def kernel(xc_ref, xs_ref, w1a_ref, w1b_ref, b1_ref, gamma_ref, beta_ref,
               w2_ref, b2_ref, o_ref, h_ref):
        i = pl.program_id(0)

        # --- fc1 on this row tile: x_conj @ W1a + x_state @ W1b + b1 ---------
        # bf16 MXU operands (inputs already bf16), f32 accumulation.
        h = jnp.dot(xc_ref[...], w1a_ref[...], preferred_element_type=jnp.float32)
        h = h + jnp.dot(xs_ref[...], w1b_ref[...], preferred_element_type=jnp.float32)
        h = h + b1_ref[...]

        start = pl.multiple_of(i * row_tile, row_tile)
        h_ref[pl.ds(start, row_tile), :] = h          # keep h VMEM-resident

        # --- last tile: BN stats + normalize + ReLU + fc2 --------------------
        @pl.when(i == n_tiles - 1)
        def _epilogue():
            h_all = h_ref[...]                                    # (b_pad, 256) f32
            if has_pad:
                rows = jax.lax.broadcasted_iota(jnp.int32, (b_pad, 1), 0)
                valid = (rows < n_valid).astype(jnp.float32)      # (b_pad, 1)
                mean = jnp.sum(h_all * valid, axis=0, keepdims=True) * inv_n
                d = (h_all - mean) * valid
            else:
                mean = jnp.sum(h_all, axis=0, keepdims=True) * inv_n
                d = h_all - mean
            # Centered, biased variance (PyTorch BN train-mode normalization).
            var = jnp.sum(d * d, axis=0, keepdims=True) * inv_n
            inv = gamma_ref[...] * jax.lax.rsqrt(var + EPS)
            shift = beta_ref[...] - mean * inv

            y = jnp.maximum(h_all * inv + shift, 0.0)             # BN + ReLU (f32)
            res = jnp.dot(y.astype(jnp.bfloat16), w2_ref[...],
                          preferred_element_type=jnp.float32) + b2_ref[...]
            o_ref[...] = res[:, :OUT_DIM]                         # narrow store

    return kernel


# ----------------------------- forward wrapper ------------------------------

def cond_classifier_forward(x_conj, x_state, params, row_tile=None):
    """CondClassifier forward. x_conj, x_state: (B, 256) float32 -> (B, 2) f32."""
    b = x_conj.shape[0]
    assert x_conj.shape == (b, IN_HALF) and x_state.shape == (b, IN_HALF)

    if row_tile is None:
        row_tile = min(512, _round_up(b, 16))   # big tiles; multiple of 16 (bf16 tiling)
    row_tile = max(16, _round_up(row_tile, 16))
    b_pad = _round_up(b, row_tile)
    n_tiles = b_pad // row_tile

    # The fused kernel keeps h (b_pad, 256) f32 resident in VMEM.
    # TODO(synk): streaming two-pass variant (per-tile partial stats summed in a
    # second kernel) for batches larger than FUSED_MAX_ROWS rows.
    assert b_pad <= FUSED_MAX_ROWS, (
        f"batch {b} (padded {b_pad}) exceeds the fused-kernel VMEM budget "
        f"({FUSED_MAX_ROWS} rows)")

    # bf16 inputs: halves fc1 HBM read; MXU operand is bf16 regardless.
    xc = x_conj.astype(jnp.bfloat16)
    xs = x_state.astype(jnp.bfloat16)
    if b_pad != b:
        pad = ((0, b_pad - b), (0, 0))
        xc = jnp.pad(xc, pad)
        xs = jnp.pad(xs, pad)

    row_map = lambda i: (i, 0)   # streamed row tiles
    const = lambda i: (0, 0)     # VMEM-resident weights / vectors / output

    cost = pl.CostEstimate(
        flops=(2 * b_pad * (2 * IN_HALF) * HIDDEN
               + 2 * b_pad * HIDDEN * OUT_PAD
               + 8 * b_pad * HIDDEN),
        transcendentals=HIDDEN,
        bytes_accessed=(2 * b_pad * IN_HALF * 2                       # bf16 inputs
                        + 2 * IN_HALF * HIDDEN * 2 + HIDDEN * OUT_PAD * 2  # bf16 weights
                        + 3 * HIDDEN * 4 + OUT_PAD * 4                # b1/gamma/beta/b2
                        + b_pad * OUT_DIM * 4))                       # output

    out = pl.pallas_call(
        _make_fused_kernel(row_tile, n_tiles, b, b_pad),
        grid=(n_tiles,),
        in_specs=[pl.BlockSpec((row_tile, IN_HALF), row_map),   # x_conj (bf16)
                  pl.BlockSpec((row_tile, IN_HALF), row_map),   # x_state (bf16)
                  pl.BlockSpec((IN_HALF, HIDDEN), const),       # W1a (bf16)
                  pl.BlockSpec((IN_HALF, HIDDEN), const),       # W1b (bf16)
                  pl.BlockSpec((1, HIDDEN), const),             # b1
                  pl.BlockSpec((1, HIDDEN), const),             # gamma
                  pl.BlockSpec((1, HIDDEN), const),             # beta
                  pl.BlockSpec((HIDDEN, OUT_PAD), const),       # W2 padded (bf16)
                  pl.BlockSpec((1, OUT_PAD), const)],           # b2 padded
        out_specs=pl.BlockSpec((b_pad, OUT_DIM), const),
        out_shape=jax.ShapeDtypeStruct((b_pad, OUT_DIM), jnp.float32),
        scratch_shapes=[pltpu.VMEM((b_pad, HIDDEN), jnp.float32)],
        compiler_params=pltpu.CompilerParams(
            dimension_semantics=("arbitrary",),   # epilogue depends on all row tiles
            vmem_limit_bytes=32 * 1024 * 1024),
        cost_estimate=cost,
    )(xc, xs, params["w1a"], params["w1b"], params["b1"],
      params["gamma"], params["beta"], params["w2p"], params["b2p"])

    return out[:b] if b_pad != b else out


# ------------------------------- parameters ---------------------------------

def init_params(key):
    k1, k2, k3, k4 = jax.random.split(key, 4)
    lim1 = 1.0 / np.sqrt(2 * IN_HALF)
    w1 = jax.random.uniform(k1, (2 * IN_HALF, HIDDEN), jnp.float32, -lim1, lim1)
    b1 = jax.random.uniform(k2, (HIDDEN,), jnp.float32, -lim1, lim1)
    lim2 = 1.0 / np.sqrt(HIDDEN)
    w2 = jax.random.uniform(k3, (HIDDEN, OUT_DIM), jnp.float32, -lim2, lim2)
    b2 = jax.random.uniform(k4, (OUT_DIM,), jnp.float32, -lim2, lim2)

    w2p = jnp.zeros((HIDDEN, OUT_PAD), jnp.float32).at[:, :OUT_DIM].set(w2)
    b2p = jnp.zeros((1, OUT_PAD), jnp.float32).at[0, :OUT_DIM].set(b2)

    return {
        "w1a": w1[:IN_HALF].astype(jnp.bfloat16),      # fc1 weight, conjecture half
        "w1b": w1[IN_HALF:].astype(jnp.bfloat16),      # fc1 weight, statement half
        "b1": b1.reshape(1, HIDDEN),
        "gamma": jnp.ones((1, HIDDEN), jnp.float32),   # bn1 default init
        "beta": jnp.zeros((1, HIDDEN), jnp.float32),
        "w2p": w2p.astype(jnp.bfloat16),               # fc2 weight, zero-padded to 128 lanes
        "b2p": b2p,
    }


def reference_forward(x_conj, x_state, p):
    """Pure-jnp f32 reference using the same bf16-stored weights / bf16 inputs."""
    xc = x_conj.astype(jnp.bfloat16).astype(jnp.float32)
    xs = x_state.astype(jnp.bfloat16).astype(jnp.float32)
    w1a = p["w1a"].astype(jnp.float32)
    w1b = p["w1b"].astype(jnp.float32)
    h = xc @ w1a + xs @ w1b + p["b1"]
    mean = jnp.mean(h, axis=0, keepdims=True)
    var = jnp.mean((h - mean) ** 2, axis=0, keepdims=True)       # biased variance
    y = jnp.maximum((h - mean) * jax.lax.rsqrt(var + EPS) * p["gamma"] + p["beta"], 0.0)
    w2 = p["w2p"].astype(jnp.float32)[:, :OUT_DIM]
    return y @ w2 + p["b2p"][:, :OUT_DIM]


if __name__ == "__main__":
    key = jax.random.PRNGKey(0)
    kp, kc1, ks1, kc2, ks2 = jax.random.split(key, 5)
    params = init_params(kp)

    fwd = jax.jit(cond_classifier_forward, static_argnames=("row_tile",))

    # Case 1: B=12 (max-pooled conjecture/statement pairs) -> one 16-row tile
    # with 4 zero-padded rows masked out of the BN statistics.
    B1 = 12
    xc1 = jax.random.normal(kc1, (B1, IN_HALF), jnp.float32)
    xs1 = jax.random.normal(ks1, (B1, IN_HALF), jnp.float32)
    out1 = jax.block_until_ready(fwd(xc1, xs1, params))
    assert out1.shape == (B1, OUT_DIM) and out1.dtype == jnp.float32
    np.testing.assert_allclose(np.asarray(out1),
                               np.asarray(reference_forward(xc1, xs1, params)),
                               rtol=5e-2, atol=5e-2)

    # Case 2: B=40 with row_tile=16 -> 3 streamed row tiles sharing the
    # VMEM-resident h scratch; padded rows only in the last tile.
    B2 = 40
    xc2 = jax.random.normal(kc2, (B2, IN_HALF), jnp.float32)
    xs2 = jax.random.normal(ks2, (B2, IN_HALF), jnp.float32)
    out2 = jax.block_until_ready(fwd(xc2, xs2, params, row_tile=16))
    assert out2.shape == (B2, OUT_DIM) and out2.dtype == jnp.float32
    np.testing.assert_allclose(np.asarray(out2),
                               np.asarray(reference_forward(xc2, xs2, params)),
                               rtol=5e-2, atol=5e-2)

    print("KERNEL_OK")
</pallas_src>

<mosaic_0001>
module attributes {stable_mosaic.version = 11 : i64} {
  func.func @kernel(%arg0: i32, %arg1: memref<16x256xbf16, #tpu.memory_space<vmem>>, %arg2: memref<16x256xbf16, #tpu.memory_space<vmem>>, %arg3: memref<256x256xbf16, #tpu.memory_space<vmem>>, %arg4: memref<256x256xbf16, #tpu.memory_space<vmem>>, %arg5: memref<1x256xf32, #tpu.memory_space<vmem>>, %arg6: memref<1x256xf32, #tpu.memory_space<vmem>>, %arg7: memref<1x256xf32, #tpu.memory_space<vmem>>, %arg8: memref<256x128xbf16, #tpu.memory_space<vmem>>, %arg9: memref<1x128xf32, #tpu.memory_space<vmem>>, %arg10: memref<16x2xf32, #tpu.memory_space<vmem>>, %arg11: memref<16x256xf32, #tpu.memory_space<vmem>>) attributes {dimension_semantics = [#tpu.dimension_semantics<arbitrary>], iteration_bounds = array<i64: 1>, scalar_prefetch = 0 : i64, scratch_operands = 1 : i64, tpu.core_type = #tpu.core_type<tc>, window_params = [{transform_indices = @transform_0, window_bounds = array<i64: 16, 256>}, {transform_indices = @transform_1, window_bounds = array<i64: 16, 256>}, {pipeline_mode = #tpu.pipeline_mode<synchronous>, transform_indices = @transform_2, window_bounds = array<i64: 256, 256>}, {pipeline_mode = #tpu.pipeline_mode<synchronous>, transform_indices = @transform_3, window_bounds = array<i64: 256, 256>}, {pipeline_mode = #tpu.pipeline_mode<synchronous>, transform_indices = @transform_4, window_bounds = array<i64: 1, 256>}, {pipeline_mode = #tpu.pipeline_mode<synchronous>, transform_indices = @transform_5, window_bounds = array<i64: 1, 256>}, {pipeline_mode = #tpu.pipeline_mode<synchronous>, transform_indices = @transform_6, window_bounds = array<i64: 1, 256>}, {pipeline_mode = #tpu.pipeline_mode<synchronous>, transform_indices = @transform_7, window_bounds = array<i64: 256, 128>}, {pipeline_mode = #tpu.pipeline_mode<synchronous>, transform_indices = @transform_8, window_bounds = array<i64: 1, 128>}, {pipeline_mode = #tpu.pipeline_mode<synchronous>, transform_indices = @transform_9, window_bounds = array<i64: 16, 2>}]} {
    %c0 = arith.constant 0 : index
    %c0_0 = arith.constant 0 : index
    %0 = vector.load %arg1[%c0, %c0_0] : memref<16x256xbf16, #tpu.memory_space<vmem>>, vector<16x256xbf16>
    %c0_1 = arith.constant 0 : index
    %c0_2 = arith.constant 0 : index
    %1 = vector.load %arg3[%c0_1, %c0_2] : memref<256x256xbf16, #tpu.memory_space<vmem>>, vector<256x256xbf16>
    %cst = arith.constant dense<0.000000e+00> : vector<16x256xf32>
    %2 = tpu.matmul %0, %1, %cst {dimension_numbers = #tpu.dot_dimension_numbers<[1], [0], [0], [1], [0, 0, 1, 1], [], []>} : vector<16x256xbf16>, vector<256x256xbf16>, vector<16x256xf32> -> vector<16x256xf32>
    %c0_3 = arith.constant 0 : index
    %c0_4 = arith.constant 0 : index
    %3 = vector.load %arg2[%c0_3, %c0_4] : memref<16x256xbf16, #tpu.memory_space<vmem>>, vector<16x256xbf16>
    %c0_5 = arith.constant 0 : index
    %c0_6 = arith.constant 0 : index
    %4 = vector.load %arg4[%c0_5, %c0_6] : memref<256x256xbf16, #tpu.memory_space<vmem>>, vector<256x256xbf16>
    %cst_7 = arith.constant dense<0.000000e+00> : vector<16x256xf32>
    %5 = tpu.matmul %3, %4, %cst_7 {dimension_numbers = #tpu.dot_dimension_numbers<[1], [0], [0], [1], [0, 0, 1, 1], [], []>} : vector<16x256xbf16>, vector<256x256xbf16>, vector<16x256xf32> -> vector<16x256xf32>
    %6 = arith.addf %2, %5 : vector<16x256xf32>
    %c0_8 = arith.constant 0 : index
    %c0_9 = arith.constant 0 : index
    %7 = vector.load %arg5[%c0_8, %c0_9] : memref<1x256xf32, #tpu.memory_space<vmem>>, vector<1x256xf32>
    %8 = vector.broadcast %7 : vector<1x256xf32> to vector<16x256xf32>
    %9 = arith.addf %6, %8 : vector<16x256xf32>
    %c16_i32 = arith.constant 16 : i32
    %10 = arith.muli %arg0, %c16_i32 : i32
    %11 = tpu.assume_multiple %10, 16 : i32
    %12 = arith.index_cast %11 : i32 to index
    %c0_10 = arith.constant 0 : index
    %13 = vector.load %arg11[%12, %c0_10] : memref<16x256xf32, #tpu.memory_space<vmem>>, vector<16x256xf32>
    tpu.vector_store %arg11[%12, %c0_10], %9 {strides = array<i32>} : memref<16x256xf32, #tpu.memory_space<vmem>>, vector<16x256xf32>,
    %c0_i32 = arith.constant 0 : i32
    %14 = arith.cmpi eq, %arg0, %c0_i32 : i32
    %15 = arith.extui %14 : i1 to i32
    %c0_i32_11 = arith.constant 0 : i32
    %16 = arith.cmpi ne, %15, %c0_i32_11 : i32
    scf.if %16 {
      %c0_12 = arith.constant 0 : index
      %c0_13 = arith.constant 0 : index
      %17 = vector.load %arg11[%c0_12, %c0_13] : memref<16x256xf32, #tpu.memory_space<vmem>>, vector<16x256xf32>
      %18 = tpu.iota {dimensions = array<i32: 0>} : vector<16x1xi32>
      %c12_i32 = arith.constant 12 : i32
      %19 = vector.broadcast %c12_i32 : i32 to vector<16x1xi32>
      %20 = arith.cmpi slt, %18, %19 : vector<16x1xi32>
      %21 = arith.extui %20 : vector<16x1xi1> to vector<16x1xi32>
      %22 = arith.sitofp %21 : vector<16x1xi32> to vector<16x1xf32>
      %23 = vector.broadcast %22 : vector<16x1xf32> to vector<16x256xf32>
      %24 = arith.mulf %17, %23 : vector<16x256xf32>
      %cst_14 = arith.constant dense<0.000000e+00> : vector<256xf32>
      %25 = vector.multi_reduction <add>, %24, %cst_14 [0] : vector<16x256xf32> to vector<256xf32>
      %26 = vector.shape_cast %25 : vector<256xf32> to vector<1x256xf32>
      %cst_15 = arith.constant 0.0833333358 : f32
      %27 = vector.broadcast %cst_15 : f32 to vector<1x256xf32>
      %28 = arith.mulf %26, %27 : vector<1x256xf32>
      %29 = vector.broadcast %28 : vector<1x256xf32> to vector<16x256xf32>
      %30 = arith.subf %17, %29 : vector<16x256xf32>
      %31 = vector.broadcast %22 : vector<16x1xf32> to vector<16x256xf32>
      %32 = arith.mulf %30, %31 : vector<16x256xf32>
      %33 = arith.mulf %32, %32 : vector<16x256xf32>
      %cst_16 = arith.constant dense<0.000000e+00> : vector<256xf32>
      %34 = vector.multi_reduction <add>, %33, %cst_16 [0] : vector<16x256xf32> to vector<256xf32>
      %35 = vector.shape_cast %34 : vector<256xf32> to vector<1x256xf32>
      %cst_17 = arith.constant 0.0833333358 : f32
      %36 = vector.broadcast %cst_17 : f32 to vector<1x256xf32>
      %37 = arith.mulf %35, %36 : vector<1x256xf32>
      %c0_18 = arith.constant 0 : index
      %c0_19 = arith.constant 0 : index
      %38 = vector.load %arg6[%c0_18, %c0_19] : memref<1x256xf32, #tpu.memory_space<vmem>>, vector<1x256xf32>
      %cst_20 = arith.constant 9.99999974E-6 : f32
      %39 = vector.broadcast %cst_20 : f32 to vector<1x256xf32>
      %40 = arith.addf %37, %39 : vector<1x256xf32>
      %41 = math.rsqrt %40 : vector<1x256xf32>
      %42 = arith.mulf %38, %41 : vector<1x256xf32>
      %c0_21 = arith.constant 0 : index
      %c0_22 = arith.constant 0 : index
      %43 = vector.load %arg7[%c0_21, %c0_22] : memref<1x256xf32, #tpu.memory_space<vmem>>, vector<1x256xf32>
      %44 = arith.mulf %28, %42 : vector<1x256xf32>
      %45 = arith.subf %43, %44 : vector<1x256xf32>
      %46 = vector.broadcast %42 : vector<1x256xf32> to vector<16x256xf32>
      %47 = arith.mulf %17, %46 : vector<16x256xf32>
      %48 = vector.broadcast %45 : vector<1x256xf32> to vector<16x256xf32>
      %49 = arith.addf %47, %48 : vector<16x256xf32>
      %cst_23 = arith.constant 0.000000e+00 : f32
      %50 = vector.broadcast %cst_23 : f32 to vector<16x256xf32>
      %51 = arith.maximumf %49, %50 : vector<16x256xf32>
      %52 = arith.truncf %51 : vector<16x256xf32> to vector<16x256xbf16>
      %c0_24 = arith.constant 0 : index
      %c0_25 = arith.constant 0 : index
      %53 = vector.load %arg8[%c0_24, %c0_25] : memref<256x128xbf16, #tpu.memory_space<vmem>>, vector<256x128xbf16>
      %cst_26 = arith.constant dense<0.000000e+00> : vector<16x128xf32>
      %54 = tpu.matmul %52, %53, %cst_26 {dimension_numbers = #tpu.dot_dimension_numbers<[1], [0], [0], [1], [0, 0, 1, 1], [], []>} : vector<16x256xbf16>, vector<256x128xbf16>, vector<16x128xf32> -> vector<16x128xf32>
      %c0_27 = arith.constant 0 : index
      %c0_28 = arith.constant 0 : index
      %55 = vector.load %arg9[%c0_27, %c0_28] : memref<1x128xf32, #tpu.memory_space<vmem>>, vector<1x128xf32>
      %56 = vector.broadcast %55 : vector<1x128xf32> to vector<16x128xf32>
      %57 = arith.addf %54, %56 : vector<16x128xf32>
      %58 = vector.extract_strided_slice %57 {offsets = [0, 0], sizes = [16, 2], strides = [1, 1]} : vector<16x128xf32> to vector<16x2xf32>
      %c0_29 = arith.constant 0 : index
      %c0_30 = arith.constant 0 : index
      %59 = vector.load %arg10[%c0_29, %c0_30] : memref<16x2xf32, #tpu.memory_space<vmem>>, vector<16x2xf32>
      tpu.vector_store %arg10[%c0_29, %c0_30], %58 {strides = array<i32>} : memref<16x2xf32, #tpu.memory_space<vmem>>, vector<16x2xf32>,
    } else {
    }
    return
  }
  func.func @transform_0(%arg0: i32) -> (i32, i32) {
    %c0_i32 = arith.constant 0 : i32
    %c0_i32_0 = arith.constant 0 : i32
    return %arg0, %c0_i32 : i32, i32
  }
  func.func @transform_1(%arg0: i32) -> (i32, i32) {
    %c0_i32 = arith.constant 0 : i32
    %c0_i32_0 = arith.constant 0 : i32
    return %arg0, %c0_i32 : i32, i32
  }
  func.func @transform_2(%arg0: i32) -> (i32, i32) {
    %c0_i32 = arith.constant 0 : i32
    %c0_i32_0 = arith.constant 0 : i32
    %c0_i32_1 = arith.constant 0 : i32
    return %c0_i32, %c0_i32_0 : i32, i32
  }
  func.func @transform_3(%arg0: i32) -> (i32, i32) {
    %c0_i32 = arith.constant 0 : i32
    %c0_i32_0 = arith.constant 0 : i32
    %c0_i32_1 = arith.constant 0 : i32
    return %c0_i32, %c0_i32_0 : i32, i32
  }
  func.func @transform_4(%arg0: i32) -> (i32, i32) {
    %c0_i32 = arith.constant 0 : i32
    %c0_i32_0 = arith.constant 0 : i32
    %c0_i32_1 = arith.constant 0 : i32
    return %c0_i32, %c0_i32_0 : i32, i32
  }
  func.func @transform_5(%arg0: i32) -> (i32, i32) {
    %c0_i32 = arith.constant 0 : i32
    %c0_i32_0 = arith.constant 0 : i32
    %c0_i32_1 = arith.constant 0 : i32
    return %c0_i32, %c0_i32_0 : i32, i32
  }
  func.func @transform_6(%arg0: i32) -> (i32, i32) {
    %c0_i32 = arith.constant 0 : i32
    %c0_i32_0 = arith.constant 0 : i32
    %c0_i32_1 = arith.constant 0 : i32
    return %c0_i32, %c0_i32_0 : i32, i32
  }
  func.func @transform_7(%arg0: i32) -> (i32, i32) {
    %c0_i32 = arith.constant 0 : i32
    %c0_i32_0 = arith.constant 0 : i32
    %c0_i32_1 = arith.constant 0 : i32
    return %c0_i32, %c0_i32_0 : i32, i32
  }
  func.func @transform_8(%arg0: i32) -> (i32, i32) {
    %c0_i32 = arith.constant 0 : i32
    %c0_i32_0 = arith.constant 0 : i32
    %c0_i32_1 = arith.constant 0 : i32
    return %c0_i32, %c0_i32_0 : i32, i32
  }
  func.func @transform_9(%arg0: i32) -> (i32, i32) {
    %c0_i32 = arith.constant 0 : i32
    %c0_i32_0 = arith.constant 0 : i32
    %c0_i32_1 = arith.constant 0 : i32
    return %c0_i32, %c0_i32_0 : i32, i32
  }
}

</mosaic_0001>

<bundles_post_ra>
// kernel: cond_classifier_forward.1
= control target key start
LH: loop header
LB: loop body
LE: loop exit
PB: predicated region body
PF: predicated region fallthrough
CT: control target
= control target key end

     0   :  { %14 = vsyncpa [#allocation4], 0  ;;  %s1567_s0 = inlined_call_operand.vmem [shape: bf16[16,256], index: 0, kind: input, shape index: {}]   ;;  %s1568_s1 = inlined_call_operand.vmem [shape: bf16[16,256], index: 1, kind: input, shape index: {}]   ;;  %s1569_s2 = inlined_call_operand.hbm [shape: bf16[256,256], index: 2, kind: input, shape index: {}]   ;;  %s1570_s3 = inlined_call_operand.hbm [shape: bf16[256,256], index: 3, kind: input, shape index: {}]   ;;  %s1571_s4 = inlined_call_operand.vmem [shape: f32[1,256], index: 4, kind: input, shape index: {}]   ;;  %s1572_s5 = inlined_call_operand.vmem [shape: f32[1,256], index: 5, kind: input, shape index: {}]   ;;  %s1573_s6 = inlined_call_operand.vmem [shape: f32[1,256], index: 6, kind: input, shape index: {}]   ;;  %s1574_s7 = inlined_call_operand.vmem [shape: bf16[256,128], index: 7, kind: input, shape index: {}]   ;;  %s1575_s8 = inlined_call_operand.vmem [shape: f32[1,128], index: 8, kind: input, shape index: {}]   ;;  %s1576_s9 = inlined_call_operand.vmem [shape: f32[16,2], index: 9, kind: output, shape index: {}]  }
   0x1   :  { %s24_s11 = sshll.u32 %s1569_s2, 4  ;;  %s25_s11 = int_to_ptr.hbm [resolvable:$true] %s24_s11 }
   0x2   :  { %15 = vsyncpa [#allocation6], 0  ;;  %s1386_s12 = smov [#allocation3]   ;;  %s37_s16 = sshll.u32 %s1570_s3, 4  ;;  %s38_s16 = int_to_ptr.hbm [resolvable:$true] %s37_s16 }
   0x3   :  { %s26_s13 = sshll.u32 %s1386_s12, 4  ;;  %s1387_s17 = smov 128   ;;  %s27_s13 = int_to_ptr.vmem [resolvable:$true] %s26_s13 }
   0x4   :  { %s1388_s18 = smov 8   ;;  %s1389_s19 = smov [#allocation5]  }
   0x5   :  { %32 = dma.hbm_to_vmem [thread:$0]  %s25_s11, 4096, %s27_s13, [#allocation4], %s1387_s17, %s1387_s17, %s1388_s18  }
   0x6   :  { %s39_s20 = sshll.u32 %s1389_s19, 4  ;;  %s40_s20 = int_to_ptr.vmem [resolvable:$true] %s39_s20 }
   0x7   :  { %45 = dma.hbm_to_vmem [thread:$0]  %s38_s16, 4096, %s40_s20, [#allocation6], %s1387_s17, %s1387_s17, %s1388_s18  }
   0x8   :  { %1382 = dma.done.wait [#allocation4], 4096  }
   0x9   :  { %1383 = vsyncadd [#allocation4], 4294963200 }
   0xa   :  { %1384 = dma.done.wait [#allocation6], 4096  }
   0xb   :  { %1385 = vsyncadd [#allocation6], 4294963200  ;;  %v969_v0 = vld [vmem:[#allocation5 + $0x70] sm:$0xf]  ;;  %v1291_v1 = vld [vmem:[#allocation5 + $0x74] sm:$0xf0] }
   0xc   :  { %v1290_v2 = vld [vmem:[#allocation5 + $0x74] sm:$0xf]  ;;  %v970_v3 = vor.u32 %v1291_v1, %v969_v0  ;;  %v971_v4 = vld [vmem:[#allocation5 + $0x78] sm:$0xf0]  ;;  %v1033_v9 = vld [vmem:[#allocation5 + $0xf0] sm:$0xf] }
   0xd   :  { %v1306_v5 = vld [vmem:[#allocation5 + $0xf4] sm:$0xf]  ;;  %v1035_v6 = vld [vmem:[#allocation5 + $0xf8] sm:$0xf0]  ;;  %v974_v7 = vor.u32 %v1290_v2, %v971_v4  ;;  %v1307_v10 = vld [vmem:[#allocation5 + $0xf4] sm:$0xf0] }
   0xe   :  { %v1038_v8 = vor.u32 %v1306_v5, %v1035_v6  ;;  %v961_v11 = vld [vmem:[#allocation5 + $0x60] sm:$0xf]  ;;  %302 = vmatpush.bf16.msra.mxu0 %v970_v3  ;;  %v1034_v12 = vor.u32 %v1307_v10, %v1033_v9  ;;  %v1289_v13 = vld [vmem:[#allocation5 + $0x64] sm:$0xf0]  ;;  %v1288_v14 = vld [vmem:[#allocation5 + $0x64] sm:$0xf] }
   0xf   :  { %v963_v15 = vld [vmem:[#allocation5 + $0x68] sm:$0xf0]  ;;  %330 = vmatpush.bf16.msra.mxu2 %v974_v7  ;;  %v962_v16 = vor.u32 %v1289_v13, %v961_v11  ;;  %v1304_v18 = vld [vmem:[#allocation5 + $0xe4] sm:$0xf]  ;;  %v1025_v20 = vld [vmem:[#allocation5 + $0xe0] sm:$0xf] }
  0x10   :  { %344 = vmatpush.bf16.msra.mxu3 %v1038_v8  ;;  %v966_v17 = vor.u32 %v1288_v14, %v963_v15  ;;  %v1027_v19 = vld [vmem:[#allocation5 + $0xe8] sm:$0xf0]  ;;  %316 = vmatpush.bf16.msra.mxu1 %v1034_v12  ;;  %v1305_v22 = vld [vmem:[#allocation5 + $0xe4] sm:$0xf0]  ;;  %v953_v23 = vld [vmem:[#allocation5 + $0x50] sm:$0xf] }
  0x11   :  { %v1030_v21 = vor.u32 %v1304_v18, %v1027_v19  ;;  %v1287_v24 = vld [vmem:[#allocation5 + $0x54] sm:$0xf0]  ;;  %v1026_v25 = vor.u32 %v1305_v22, %v1025_v20  ;;  %v1286_v26 = vld [vmem:[#allocation5 + $0x54] sm:$0xf]  ;;  %v955_v27 = vld [vmem:[#allocation5 + $0x58] sm:$0xf0] }
  0x12   :  { %v1302_v28 = vld [vmem:[#allocation5 + $0xd4] sm:$0xf]  ;;  %303 = vmatpush.bf16.msra.mxu0 %v962_v16  ;;  %v954_v29 = vor.u32 %v1287_v24, %v953_v23  ;;  %v1019_v30 = vld [vmem:[#allocation5 + $0xd8] sm:$0xf0]  ;;  %v1017_v31 = vld [vmem:[#allocation5 + $0xd0] sm:$0xf]  ;;  %v958_v33 = vor.u32 %v1286_v26, %v955_v27 }
  0x13   :  { %v1303_v32 = vld [vmem:[#allocation5 + $0xd4] sm:$0xf0]  ;;  %331 = vmatpush.bf16.msra.mxu2 %v966_v17  ;;  %v1022_v34 = vor.u32 %v1302_v28, %v1019_v30  ;;  %v945_v35 = vld [vmem:[#allocation5 + $0x40] sm:$0xf]  ;;  %v1285_v36 = vld [vmem:[#allocation5 + $0x44] sm:$0xf0] }
  0x14   :  { %345 = vmatpush.bf16.msra.mxu3 %v1030_v21  ;;  %v1284_v37 = vld [vmem:[#allocation5 + $0x44] sm:$0xf]  ;;  %317 = vmatpush.bf16.msra.mxu1 %v1026_v25  ;;  %v1018_v38 = vor.u32 %v1303_v32, %v1017_v31  ;;  %v947_v39 = vld [vmem:[#allocation5 + $0x48] sm:$0xf0]  ;;  %v1009_v42 = vld [vmem:[#allocation5 + $0xc0] sm:$0xf]  ;;  %v946_v44 = vor.u32 %v1285_v36, %v945_v35 }
  0x15   :  { %v1300_v40 = vld [vmem:[#allocation5 + $0xc4] sm:$0xf]  ;;  %v1011_v41 = vld [vmem:[#allocation5 + $0xc8] sm:$0xf0]  ;;  %v1301_v43 = vld [vmem:[#allocation5 + $0xc4] sm:$0xf0]  ;;  %v950_v45 = vor.u32 %v1284_v37, %v947_v39 }
  0x16   :  { %304 = vmatpush.bf16.msra.mxu0 %v954_v29  ;;  %v1014_v46 = vor.u32 %v1300_v40, %v1011_v41  ;;  %v937_v47 = vld [vmem:[#allocation5 + $0x30] sm:$0xf]  ;;  %v1283_v48 = vld [vmem:[#allocation5 + $0x34] sm:$0xf0]  ;;  %v1282_v49 = vld [vmem:[#allocation5 + $0x34] sm:$0xf]  ;;  %v1010_v50 = vor.u32 %v1301_v43, %v1009_v42 }
  0x17   :  { %332 = vmatpush.bf16.msra.mxu2 %v958_v33  ;;  %v939_v51 = vld [vmem:[#allocation5 + $0x38] sm:$0xf0]  ;;  %v1298_v52 = vld [vmem:[#allocation5 + $0xb4] sm:$0xf]  ;;  %v1001_v54 = vld [vmem:[#allocation5 + $0xb0] sm:$0xf]  ;;  %v938_v56 = vor.u32 %v1283_v48, %v937_v47 }
  0x18   :  { %346 = vmatpush.bf16.msra.mxu3 %v1022_v34  ;;  %318 = vmatpush.bf16.msra.mxu1 %v1018_v38  ;;  %v1003_v53 = vld [vmem:[#allocation5 + $0xb8] sm:$0xf0]  ;;  %v1299_v55 = vld [vmem:[#allocation5 + $0xb4] sm:$0xf0]  ;;  %v942_v57 = vor.u32 %v1282_v49, %v939_v51  ;;  %v929_v59 = vld [vmem:[#allocation5 + $0x20] sm:$0xf] }
  0x19   :  { %v1006_v58 = vor.u32 %v1298_v52, %v1003_v53  ;;  %v1281_v60 = vld [vmem:[#allocation5 + $0x24] sm:$0xf0]  ;;  %v1280_v61 = vld [vmem:[#allocation5 + $0x24] sm:$0xf]  ;;  %v1002_v62 = vor.u32 %v1299_v55, %v1001_v54  ;;  %v931_v63 = vld [vmem:[#allocation5 + $0x28] sm:$0xf0] }
  0x1a   :  { %305 = vmatpush.bf16.msra.mxu0 %v946_v44  ;;  %v1296_v0 = vld [vmem:[#allocation5 + $0xa4] sm:$0xf]  ;;  %v995_v1 = vld [vmem:[#allocation5 + $0xa8] sm:$0xf0]  ;;  %v993_v2 = vld [vmem:[#allocation5 + $0xa0] sm:$0xf]  ;;  %v930_v4 = vor.u32 %v1281_v60, %v929_v59  ;;  %v934_v5 = vor.u32 %v1280_v61, %v931_v63 }
  0x1b   :  { %333 = vmatpush.bf16.msra.mxu2 %v950_v45  ;;  %v1297_v3 = vld [vmem:[#allocation5 + $0xa4] sm:$0xf0]  ;;  %v998_v6 = vor.u32 %v1296_v0, %v995_v1  ;;  %v921_v7 = vld [vmem:[#allocation5 + $0x10] sm:$0xf]  ;;  %v1279_v8 = vld [vmem:[#allocation5 + $0x14] sm:$0xf0] }
  0x1c   :  { %347 = vmatpush.bf16.msra.mxu3 %v1014_v46  ;;  %319 = vmatpush.bf16.msra.mxu1 %v1010_v50  ;;  %v1278_v9 = vld [vmem:[#allocation5 + $0x14] sm:$0xf]  ;;  %v994_v10 = vor.u32 %v1297_v3, %v993_v2  ;;  %v923_v11 = vld [vmem:[#allocation5 + $0x18] sm:$0xf0]  ;;  %v985_v14 = vld [vmem:[#allocation5 + $0x90] sm:$0xf]  ;;  %v922_v16 = vor.u32 %v1279_v8, %v921_v7 }
  0x1d   :  { %v1294_v12 = vld [vmem:[#allocation5 + $0x94] sm:$0xf]  ;;  %v987_v13 = vld [vmem:[#allocation5 + $0x98] sm:$0xf0]  ;;  %v1295_v15 = vld [vmem:[#allocation5 + $0x94] sm:$0xf0]  ;;  %v926_v20 = vor.u32 %v1278_v9, %v923_v11 }
  0x1e   :  { %306 = vmatpush.bf16.msra.mxu0 %v938_v56  ;;  %v913_v17 = vld [vmem:[#allocation5] sm:$0xf]  ;;  %v1277_v18 = vld [vmem:[#allocation5 + $0x4] sm:$0xf0]  ;;  %v1276_v19 = vld [vmem:[#allocation5 + $0x4] sm:$0xf]  ;;  %v990_v21 = vor.u32 %v1294_v12, %v987_v13  ;;  %v986_v25 = vor.u32 %v1295_v15, %v985_v14 }
  0x1f   :  { %334 = vmatpush.bf16.msra.mxu2 %v942_v57  ;;  %v915_v22 = vld [vmem:[#allocation5 + $0x8] sm:$0xf0]  ;;  %v1292_v23 = vld [vmem:[#allocation5 + $0x84] sm:$0xf]  ;;  %v1105_v26 = vld [vmem:[#allocation3 + $0x70] sm:$0xf]  ;;  %v914_v32 = vor.u32 %v1277_v18, %v913_v17 }
  0x20   :  { %348 = vmatpush.bf16.msra.mxu3 %v1006_v58  ;;  %320 = vmatpush.bf16.msra.mxu1 %v1002_v62  ;;  %v979_v24 = vld [vmem:[#allocation5 + $0x88] sm:$0xf0]  ;;  %v1257_v27 = vld [vmem:[#allocation3 + $0x74] sm:$0xf0]  ;;  %v1256_v28 = vld [vmem:[#allocation3 + $0x74] sm:$0xf]  ;;  %v918_v36 = vor.u32 %v1276_v19, %v915_v22 }
  0x21   :  { %v1107_v29 = vld [vmem:[#allocation3 + $0x78] sm:$0xf0]  ;;  %v1272_v30 = vld [vmem:[#allocation3 + $0xf4] sm:$0xf]  ;;  %v977_v33 = vld [vmem:[#allocation5 + $0x80] sm:$0xf]  ;;  %v982_v37 = vor.u32 %v1292_v23, %v979_v24  ;;  %v1106_v41 = vor.u32 %v1257_v27, %v1105_v26 }
  0x22   :  { %307 = vmatpush.bf16.msra.mxu0 %v930_v4  ;;  %v1171_v31 = vld [vmem:[#allocation3 + $0xf8] sm:$0xf0]  ;;  %v1293_v34 = vld [vmem:[#allocation5 + $0x84] sm:$0xf0]  ;;  %v1169_v35 = vld [vmem:[#allocation3 + $0xf0] sm:$0xf]  ;;  %v1110_v42 = vor.u32 %v1256_v28, %v1107_v29 }
  0x23   :  { %335 = vmatpush.bf16.msra.mxu2 %v934_v5  ;;  %v1273_v38 = vld [vmem:[#allocation3 + $0xf4] sm:$0xf0]  ;;  %v905_v39 = vld [vmem:[%s1568_s1] sm:$0xf]  ;;  %v1275_v40 = vld [vmem:[%s1568_s1 + $0x4] sm:$0xf0]  ;;  %v1174_v46 = vor.u32 %v1272_v30, %v1171_v31  ;;  %v978_v47 = vor.u32 %v1293_v34, %v977_v33 }
  0x24   :  { %349 = vmatpush.bf16.msra.mxu3 %v998_v6  ;;  %321 = vmatpush.bf16.msra.mxu1 %v994_v10  ;;  %v1097_v43 = vld [vmem:[#allocation3 + $0x60] sm:$0xf]  ;;  %v1274_v44 = vld [vmem:[%s1568_s1 + $0x4] sm:$0xf]  ;;  %v907_v45 = vld [vmem:[%s1568_s1 + $0x8] sm:$0xf0]  ;;  %v1170_v51 = vor.u32 %v1273_v38, %v1169_v35  ;;  %v906_v54 = vor.u32 %v1275_v40, %v905_v39 }
  0x25   :  { %v1255_v48 = vld [vmem:[#allocation3 + $0x64] sm:$0xf0]  ;;  %v1254_v49 = vld [vmem:[#allocation3 + $0x64] sm:$0xf]  ;;  %v1099_v50 = vld [vmem:[#allocation3 + $0x68] sm:$0xf0]  ;;  %v910_v57 = vor.u32 %v1274_v44, %v907_v45 }
  0x26   :  { %308 = vmatpush.bf16.msra.mxu0 %v922_v16  ;;  %v1270_v52 = vld [vmem:[#allocation3 + $0xe4] sm:$0xf]  ;;  %v1163_v53 = vld [vmem:[#allocation3 + $0xe8] sm:$0xf0]  ;;  %v1161_v55 = vld [vmem:[#allocation3 + $0xe0] sm:$0xf]  ;;  %v1098_v58 = vor.u32 %v1255_v48, %v1097_v43  ;;  %v1102_v59 = vor.u32 %v1254_v49, %v1099_v50 }
  0x27   :  { %336 = vmatpush.bf16.msra.mxu2 %v926_v20  ;;  %v1271_v56 = vld [vmem:[#allocation3 + $0xe4] sm:$0xf0]  ;;  %v1089_v60 = vld [vmem:[#allocation3 + $0x50] sm:$0xf]  ;;  %v1166_v61 = vor.u32 %v1270_v52, %v1163_v53  ;;  %v1253_v62 = vld [vmem:[#allocation3 + $0x54] sm:$0xf0] }
  0x28   :  { %350 = vmatpush.bf16.msra.mxu3 %v990_v21  ;;  %322 = vmatpush.bf16.msra.mxu1 %v986_v25  ;;  %v1252_v63 = vld [vmem:[#allocation3 + $0x54] sm:$0xf]  ;;  %v1091_v0 = vld [vmem:[#allocation3 + $0x58] sm:$0xf0]  ;;  %v1162_v1 = vor.u32 %v1271_v56, %v1161_v55  ;;  %v1153_v4 = vld [vmem:[#allocation3 + $0xd0] sm:$0xf]  ;;  %v1090_v6 = vor.u32 %v1253_v62, %v1089_v60 }
  0x29   :  { %v1268_v2 = vld [vmem:[#allocation3 + $0xd4] sm:$0xf]  ;;  %v1155_v3 = vld [vmem:[#allocation3 + $0xd8] sm:$0xf0]  ;;  %v1269_v5 = vld [vmem:[#allocation3 + $0xd4] sm:$0xf0]  ;;  %v1094_v7 = vor.u32 %v1252_v63, %v1091_v0 }
  0x2a   :  { %309 = vmatpush.bf16.msra.mxu0 %v914_v32  ;;  %v1081_v8 = vld [vmem:[#allocation3 + $0x40] sm:$0xf]  ;;  %v1158_v9 = vor.u32 %v1268_v2, %v1155_v3  ;;  %v1251_v10 = vld [vmem:[#allocation3 + $0x44] sm:$0xf0]  ;;  %v1250_v11 = vld [vmem:[#allocation3 + $0x44] sm:$0xf]  ;;  %v1154_v13 = vor.u32 %v1269_v5, %v1153_v4 }
  0x2b   :  { %337 = vmatpush.bf16.msra.mxu2 %v918_v36  ;;  %v1083_v12 = vld [vmem:[#allocation3 + $0x48] sm:$0xf0]  ;;  %v1266_v14 = vld [vmem:[#allocation3 + $0xc4] sm:$0xf]  ;;  %v1145_v16 = vld [vmem:[#allocation3 + $0xc0] sm:$0xf]  ;;  %v1082_v18 = vor.u32 %v1251_v10, %v1081_v8 }
  0x2c   :  { %351 = vmatpush.bf16.msra.mxu3 %v982_v37  ;;  %323 = vmatpush.bf16.msra.mxu1 %v978_v47  ;;  %v1147_v15 = vld [vmem:[#allocation3 + $0xc8] sm:$0xf0]  ;;  %v1267_v17 = vld [vmem:[#allocation3 + $0xc4] sm:$0xf0]  ;;  %v1086_v19 = vor.u32 %v1250_v11, %v1083_v12  ;;  %v1073_v20 = vld [vmem:[#allocation3 + $0x30] sm:$0xf] }
  0x2d   :  { %310 = vmatmul.bf16.vlgmr.msra.gmra.mxu0 %v906_v54  ;;  %v1150_v21 = vor.u32 %v1266_v14, %v1147_v15  ;;  %v1249_v22 = vld [vmem:[#allocation3 + $0x34] sm:$0xf0]  ;;  %v1248_v23 = vld [vmem:[#allocation3 + $0x34] sm:$0xf]  ;;  %v1075_v24 = vld [vmem:[#allocation3 + $0x38] sm:$0xf0]  ;;  %v1146_v25 = vor.u32 %v1267_v17, %v1145_v16 }
  0x2e   :  { %528 = vmatpush.bf16.msrb.mxu0 %v1106_v41  ;;  %338 = vmatmul.bf16.vlgmr.msra.gmra.mxu2 %v906_v54  ;;  %v1264_v26 = vld [vmem:[#allocation3 + $0xb4] sm:$0xf]  ;;  %v1139_v27 = vld [vmem:[#allocation3 + $0xb8] sm:$0xf0]  ;;  %v1137_v28 = vld [vmem:[#allocation3 + $0xb0] sm:$0xf]  ;;  %v1074_v30 = vor.u32 %v1249_v22, %v1073_v20  ;;  %v1078_v31 = vor.u32 %v1248_v23, %v1075_v24 }
  0x2f   :  { %556 = vmatpush.bf16.msrb.mxu2 %v1110_v42  ;;  %352 = vmatmul.bf16.vlgmr.msra.gmra.mxu3 %v910_v57  ;;  %v1265_v29 = vld [vmem:[#allocation3 + $0xb4] sm:$0xf0]  ;;  %v1065_v32 = vld [vmem:[#allocation3 + $0x20] sm:$0xf]  ;;  %v1142_v33 = vor.u32 %v1264_v26, %v1139_v27  ;;  %v1247_v34 = vld [vmem:[#allocation3 + $0x24] sm:$0xf0] }
  0x30   :  { %570 = vmatpush.bf16.msrb.mxu3 %v1174_v46  ;;  %542 = vmatpush.bf16.msrb.mxu1 %v1170_v51  ;;  %v1246_v35 = vld [vmem:[#allocation3 + $0x24] sm:$0xf]  ;;  %v1067_v36 = vld [vmem:[#allocation3 + $0x28] sm:$0xf0]  ;;  %v1138_v37 = vor.u32 %v1265_v29, %v1137_v28  ;;  %v1129_v40 = vld [vmem:[#allocation3 + $0xa0] sm:$0xf]  ;;  %v1066_v42 = vor.u32 %v1247_v34, %v1065_v32 }
  0x31   :  { %324 = vmatmul.bf16.vlgmr.msra.gmra.mxu1 %v910_v57  ;;  %v1262_v38 = vld [vmem:[#allocation3 + $0xa4] sm:$0xf]  ;;  %v1131_v39 = vld [vmem:[#allocation3 + $0xa8] sm:$0xf0]  ;;  %v1263_v41 = vld [vmem:[#allocation3 + $0xa4] sm:$0xf0]  ;;  %v1070_v43 = vor.u32 %v1246_v35, %v1067_v36 }
  0x32   :  { %529 = vmatpush.bf16.msrb.mxu0 %v1098_v58  ;;  %v1057_v44 = vld [vmem:[#allocation3 + $0x10] sm:$0xf]  ;;  %v1134_v45 = vor.u32 %v1262_v38, %v1131_v39  ;;  %v1245_v46 = vld [vmem:[#allocation3 + $0x14] sm:$0xf0]  ;;  %v1244_v47 = vld [vmem:[#allocation3 + $0x14] sm:$0xf]  ;;  %v1130_v49 = vor.u32 %v1263_v41, %v1129_v40 }
  0x33   :  { %557 = vmatpush.bf16.msrb.mxu2 %v1102_v59  ;;  %v1059_v48 = vld [vmem:[#allocation3 + $0x18] sm:$0xf0]  ;;  %v1260_v50 = vld [vmem:[#allocation3 + $0x94] sm:$0xf]  ;;  %v1121_v52 = vld [vmem:[#allocation3 + $0x90] sm:$0xf]  ;;  %v1058_v54 = vor.u32 %v1245_v46, %v1057_v44 }
  0x34   :  { %571 = vmatpush.bf16.msrb.mxu3 %v1166_v61  ;;  %543 = vmatpush.bf16.msrb.mxu1 %v1162_v1  ;;  %v1123_v51 = vld [vmem:[#allocation3 + $0x98] sm:$0xf0]  ;;  %v1261_v53 = vld [vmem:[#allocation3 + $0x94] sm:$0xf0]  ;;  %v1062_v55 = vor.u32 %v1244_v47, %v1059_v48  ;;  %v1049_v56 = vld [vmem:[#allocation3] sm:$0xf] }
  0x35   :  { %v1126_v57 = vor.u32 %v1260_v50, %v1123_v51  ;;  %v1243_v58 = vld [vmem:[#allocation3 + $0x4] sm:$0xf0]  ;;  %v1242_v59 = vld [vmem:[#allocation3 + $0x4] sm:$0xf]  ;;  %v1051_v60 = vld [vmem:[#allocation3 + $0x8] sm:$0xf0]  ;;  %v1122_v61 = vor.u32 %v1261_v53, %v1121_v52 }
  0x36   :  { %530 = vmatpush.bf16.msrb.mxu0 %v1090_v6  ;;  %v1258_v62 = vld [vmem:[#allocation3 + $0x84] sm:$0xf]  ;;  %v1115_v63 = vld [vmem:[#allocation3 + $0x88] sm:$0xf0]  ;;  %v1113_v0 = vld [vmem:[#allocation3 + $0x80] sm:$0xf]  ;;  %v1050_v2 = vor.u32 %v1243_v58, %v1049_v56  ;;  %v1054_v3 = vor.u32 %v1242_v59, %v1051_v60 }
  0x37   :  { %558 = vmatpush.bf16.msrb.mxu2 %v1094_v7  ;;  %v1259_v1 = vld [vmem:[#allocation3 + $0x84] sm:$0xf0]  ;;  %v1041_v4 = vld [vmem:[%s1567_s0] sm:$0xf]  ;;  %v1118_v6 = vor.u32 %v1258_v62, %v1115_v63  ;;  %v1240_v7 = vld [vmem:[%s1567_s0 + $0x4] sm:$0xf] }
  0x38   :  { %572 = vmatpush.bf16.msrb.mxu3 %v1158_v9  ;;  %544 = vmatpush.bf16.msrb.mxu1 %v1154_v13  ;;  %v1241_v5 = vld [vmem:[%s1567_s0 + $0x4] sm:$0xf0]  ;;  %v1043_v8 = vld [vmem:[%s1567_s0 + $0x8] sm:$0xf0]  ;;  %v1114_v9 = vor.u32 %v1259_v1, %v1113_v0  ;;  %v1390_v38 = vmov 0.0   ;;  %vm695_vm6 = vcmask 1040384  }
  0x39   :  { %v1042_v10 = vor.u32 %v1241_v5, %v1041_v4  ;;  %v1046_v11 = vor.u32 %v1240_v7, %v1043_v8  ;;  %vm892_vm8 = vcmask 15360  }
  0x3a   :  { %531 = vmatpush.bf16.msrb.mxu0 %v1082_v18  ;;  %v612_v18 = vlaneseq }
  0x3b   :  { %559 = vmatpush.bf16.msrb.mxu2 %v1086_v19 }
  0x3c   :  { %573 = vmatpush.bf16.msrb.mxu3 %v1150_v21  ;;  %545 = vmatpush.bf16.msrb.mxu1 %v1146_v25  ;;  %v613_v22 = vshrl.u32 %v612_v18, 7 }
  0x3e   :  { %532 = vmatpush.bf16.msrb.mxu0 %v1074_v30  ;;  %v614_v25 = vadd.s32 8, %v613_v22  ;;  %v584_v30 = vld [vmem:[%s1571_s4] sm:$0x3]  ;;  %v1322_v22 = vld [vmem:[%s1574_s7 + $0x70] sm:$0xff] }
  0x3f   :  { %560 = vmatpush.bf16.msrb.mxu2 %v1078_v31  ;;  %v586_v36 = vperm.slane %v584_v30, 0 }
  0x40   :  { %574 = vmatpush.bf16.msrb.mxu3 %v1142_v33  ;;  %546 = vmatpush.bf16.msrb.mxu1 %v1138_v37  ;;  %vm616_vm0 = vcmp.lt.s32.totalorder %v614_v25, 12 }
  0x41   :  { %v1175_v39 = vsel %vm616_vm0, 1.0, %v1390_v38 }
  0x42   :  { %533 = vmatpush.bf16.msrb.mxu0 %v1066_v42 }
  0x43   :  { %561 = vmatpush.bf16.msrb.mxu2 %v1070_v43 }
  0x44   :  { %575 = vmatpush.bf16.msrb.mxu3 %v1134_v45  ;;  %547 = vmatpush.bf16.msrb.mxu1 %v1130_v49  ;;  %v587_v49 = vperm.slane %v584_v30, 1 }
  0x46   :  { %534 = vmatpush.bf16.msrb.mxu0 %v1058_v54 }
  0x47   :  { %562 = vmatpush.bf16.msrb.mxu2 %v1062_v55 }
  0x48   :  { %576 = vmatpush.bf16.msrb.mxu3 %v1126_v57  ;;  %548 = vmatpush.bf16.msrb.mxu1 %v1122_v61 }
  0x4a   :  { %535 = vmatpush.bf16.msrb.mxu0 %v1050_v2 }
  0x4b   :  { %563 = vmatpush.bf16.msrb.mxu2 %v1054_v3 }
  0x4c   :  { %577 = vmatpush.bf16.msrb.mxu3 %v1118_v6  ;;  %549 = vmatpush.bf16.msrb.mxu1 %v1114_v9 }
  0x4d   :  { %536 = vmatmul.bf16.vlgmr.msrb.gmra.mxu0 %v1042_v10 }
  0x4e   :  { %564 = vmatmul.bf16.vlgmr.msrb.gmra.mxu2 %v1042_v10 }
  0x4f   :  { %578 = vmatmul.bf16.vlgmr.msrb.gmra.mxu3 %v1046_v11  ;;  %550 = vmatmul.bf16.vlgmr.msrb.gmra.mxu1 %v1046_v11 }
  0xaa   :  { %v311_v12 = vpop.f32.mrf.mxu0 }
  0xae   :  { %v325_v13 = vpop.f32.mrf.mxu1 }
  0xaf   :  { %v326_v24 = vadd.f32 %v325_v13, %v311_v12 }
  0xb1   :  { %v339_v14 = vpop.f32.mrf.mxu2 }
  0xb2   :  { %v353_v15 = vpop.f32.mrf.mxu3  ;;  %v313_v16 = vpop.f32.mrf.mxu0 }
  0xb3   :  { %v354_v34 = vadd.f32 %v353_v15, %v339_v14  ;;  %v1315_v14 = vld [vmem:[%s1574_s7 + $0x38] sm:$0xff] }
  0xb4   :  { %v1323_v15 = vld [vmem:[%s1574_s7 + $0x78] sm:$0xff]  ;;  %864 = vmatpush.bf16.msra.mxu0 %v1315_v14 }
  0xb5   :  { %878 = vmatpush.bf16.msra.mxu1 %v1323_v15 }
  0xb6   :  { %v327_v17 = vpop.f32.mrf.mxu1 }
  0xb7   :  { %v328_v27 = vadd.f32 %v327_v17, %v313_v16 }
  0xb9   :  { %v341_v19 = vpop.f32.mrf.mxu2  ;;  %879 = vmatpush.bf16.msra.mxu1 %v1322_v22 }
  0xba   :  { %v355_v20 = vpop.f32.mrf.mxu3 }
  0xbb   :  { %v356_v40 = vadd.f32 %v355_v20, %v341_v19 }
  0xca   :  { %v537_v21 = vpop.f32.mrf.mxu0 }
  0xcb   :  { %v538_v28 = vadd.f32 %v537_v21, %v326_v24  ;;  %v1314_v21 = vld [vmem:[%s1574_s7 + $0x30] sm:$0xff] }
  0xcc   :  { %v551_v23 = vpop.f32.mrf.mxu1  ;;  %865 = vmatpush.bf16.msra.mxu0 %v1314_v21 }
  0xcd   :  { %v552_v35 = vadd.f32 %v551_v23, %v538_v28  ;;  %v1321_v28 = vld [vmem:[%s1574_s7 + $0x68] sm:$0xff] }
  0xce   :  { %880 = vmatpush.bf16.msra.mxu1 %v1321_v28 }
  0xcf   :  { %v1476_v44 = vadd.f32 %v586_v36, %v552_v35 }
  0xd1   :  { %v565_v26 = vpop.f32.mrf.mxu2 }
  0xd2   :  { %v579_v29 = vpop.f32.mrf.mxu3  ;;  %v539_v31 = vpop.f32.mrf.mxu0  ;;  %v566_v41 = vadd.f32 %v565_v26, %v354_v34  ;;  %v1320_v34 = vld [vmem:[%s1574_s7 + $0x60] sm:$0xff] }
  0xd3   :  { %v540_v32 = vadd.f32 %v539_v31, %v328_v27  ;;  %v1313_v27 = vld [vmem:[%s1574_s7 + $0x28] sm:$0xff]  ;;  %881 = vmatpush.bf16.msra.mxu1 %v1320_v34 }
  0xd4   :  { %v553_v33 = vpop.f32.mrf.mxu1  ;;  %v580_v48 = vadd.f32 %v579_v29, %v566_v41  ;;  %866 = vmatpush.bf16.msra.mxu0 %v1313_v27 }
  0xd5   :  { %v554_v37 = vadd.f32 %v553_v33, %v540_v32  ;;  %v1312_v33 = vld [vmem:[%s1574_s7 + $0x20] sm:$0xff] }
  0xd6   :  { %v1482_v54 = vadd.f32 %v587_v49, %v580_v48 }
  0xd7   :  { %v1474_v42 = vadd.f32 %v586_v36, %v554_v37 }
  0xd8   :  { %867 = vmatpush.bf16.msra.mxu0 %v1312_v33 }
  0xd9   :  { %v567_v43 = vpop.f32.mrf.mxu2  ;;  %v623_v45 = vmul.f32 %v1175_v39, %v1474_v42 }
  0xda   :  { %v568_v46 = vadd.f32 %v567_v43, %v356_v40  ;;  %v581_v47 = vpop.f32.mrf.mxu3  ;;  %v1319_v40 = vld [vmem:[%s1574_s7 + $0x58] sm:$0xff] }
  0xdb   :  { %v625_v50 = vadd.f32 %v623_v45, %v1476_v44  ;;  %882 = vmatpush.bf16.msra.mxu1 %v1319_v40  ;;  %v1310_v45 = vld [vmem:[%s1574_s7 + $0x10] sm:$0xff] }
  0xdc   :  { %v582_v51 = vadd.f32 %v581_v47, %v568_v46  ;;  %v1318_v46 = vld [vmem:[%s1574_s7 + $0x50] sm:$0xff] }
  0xdd   :  { %v626_v52 = vrot.slane %v625_v50, 4 }
  0xde   :  { %v1480_v53 = vadd.f32 %v587_v49, %v582_v51  ;;  %v1309_v49 = vld [vmem:[%s1574_s7 + $0x8] sm:$0xff] }
  0xdf   :  { %v627_v55 = vadd.f32 %v626_v52, %v625_v50  ;;  %883 = vmatpush.bf16.msra.mxu1 %v1318_v46  ;;  %v1317_v50 = vld [vmem:[%s1574_s7 + $0x48] sm:$0xff]  ;;  %v1308_v52 = vld [vmem:[%s1574_s7] sm:$0xff] }
  0xe0   :  { %v624_v56 = vmul.f32 %v1175_v39, %v1480_v53 }
  0xe1   :  { %v628_v57 = vrot.slane %v627_v55, 2 }
  0xe2   :  { %v632_v58 = vadd.f32 %v624_v56, %v1482_v54 }
  0xe3   :  { %v629_v59 = vadd.f32 %v628_v57, %v627_v55  ;;  %884 = vmatpush.bf16.msra.mxu1 %v1317_v50  ;;  %v1316_v55 = vld [vmem:[%s1574_s7 + $0x40] sm:$0xff] }
  0xe4   :  { %v633_v60 = vrot.slane %v632_v58, 4 }
  0xe5   :  { %v630_v61 = vrot.slane %v629_v59, 1 }
  0xe6   :  { %v634_v62 = vadd.f32 %v633_v60, %v632_v58 }
  0xe7   :  { %v631_v63 = vadd.f32 %v630_v61, %v629_v59  ;;  %885 = vmatpush.bf16.msra.mxu1 %v1316_v55 }
  0xe8   :  { %v635_v0 = vrot.slane %v634_v62, 2 }
  0xe9   :  { %v1486_v1 = vmul.f32 0.083333336, %v631_v63 }
  0xea   :  { %v636_v2 = vadd.f32 %v635_v0, %v634_v62 }
  0xeb   :  { %v641_v3 = vsub.f32 %v1476_v44, %v1486_v1  ;;  %v643_v4 = vsub.f32 %v1474_v42, %v1486_v1 }
  0xec   :  { %v637_v5 = vrot.slane %v636_v2, 1 }
  0xed   :  { %v647_v6 = vmul.f32 %v1175_v39, %v643_v4  ;;  %v649_v8 = vmul.f32 %v641_v3, %v641_v3  ;;  %v669_v4 = vld [vmem:[%s1572_s5] sm:$0x3] }
  0xee   :  { %v638_v7 = vadd.f32 %v637_v5, %v636_v2 }
  0xef   :  { %v651_v9 = vmul.f32 %v647_v6, %v647_v6 }
  0xf0   :  { %v1492_v10 = vmul.f32 0.083333336, %v638_v7 }
  0xf1   :  { %v653_v11 = vadd.f32 %v651_v9, %v649_v8 }
  0xf2   :  { %v642_v12 = vsub.f32 %v1482_v54, %v1492_v10  ;;  %v644_v13 = vsub.f32 %v1480_v53, %v1492_v10 }
  0xf3   :  { %v654_v16 = vrot.slane %v653_v11, 4 }
  0xf4   :  { %v648_v17 = vmul.f32 %v1175_v39, %v644_v13  ;;  %v650_v19 = vmul.f32 %v642_v12, %v642_v12  ;;  %v1311_v39 = vld [vmem:[%s1574_s7 + $0x18] sm:$0xff]  ;;  %v699_v13 = vld [vmem:[%s1573_s6] sm:$0x3] }
  0xf5   :  { %v655_v18 = vadd.f32 %v654_v16, %v653_v11  ;;  %868 = vmatpush.bf16.msra.mxu0 %v1311_v39 }
  0xf6   :  { %v652_v20 = vmul.f32 %v648_v17, %v648_v17 }
  0xf7   :  { %v656_v23 = vrot.slane %v655_v18, 2 }
  0xf8   :  { %v660_v24 = vadd.f32 %v652_v20, %v650_v19 }
  0xf9   :  { %v657_v25 = vadd.f32 %v656_v23, %v655_v18  ;;  %869 = vmatpush.bf16.msra.mxu0 %v1310_v45 }
  0xfa   :  { %v661_v26 = vrot.slane %v660_v24, 4 }
  0xfb   :  { %v658_v29 = vrot.slane %v657_v25, 1 }
  0xfc   :  { %v662_v30 = vadd.f32 %v661_v26, %v660_v24 }
  0xfd   :  { %v659_v31 = vadd.f32 %v658_v29, %v657_v25  ;;  %870 = vmatpush.bf16.msra.mxu0 %v1309_v49 }
  0xfe   :  { %v663_v32 = vrot.slane %v662_v30, 2 }
  0xff   :  { %v667_v35 = vmul.f32 0.083333336, %v659_v31 }
 0x100   :  { %v664_v36 = vadd.f32 %v663_v32, %v662_v30 }
 0x101   :  { %v670_v37 = vadd.f32 1e-05, %v667_v35  ;;  %871 = vmatpush.bf16.msra.mxu0 %v1308_v52 }
 0x102   :  { %v665_v38 = vrot.slane %v664_v36, 1 }
 0x103   :  { %1330 = vrsqrt.f32 %v670_v37  ;;  %vm678_vm5 = vweird.f32 %v670_v37 }
 0x104   :  { %v666_v41 = vadd.f32 %v665_v38, %v664_v36 }
 0x106   :  { %v668_v43 = vmul.f32 0.083333336, %v666_v41 }
 0x108   :  { %v671_v47 = vadd.f32 1e-05, %v668_v43 }
 0x109   :  { %v1331_v48 = vpop.eup %1330 }
 0x10a   :  { %1332 = vrsqrt.f32 %v671_v47  ;;  %v673_v51 = vmul.f32 %v1331_v48, %v670_v37  ;;  %vm679_vm2 = vweird.f32 %v1331_v48  ;;  %vm688_vm3 = vweird.f32 %v671_v47 }
 0x10b   :  { %vm680_vm7 = vmor %vm678_vm5, %vm679_vm2 }
 0x10c   :  { %v674_v56 = vmul.f32 %v1331_v48, %v673_v51 }
 0x10e   :  { %v675_v58 = vmul.f32 0.5, %v674_v56 }
 0x110   :  { %v1333_v57 = vpop.eup %1332  ;;  %v676_v61 = vsub.f32 1.5, %v675_v58 }
 0x111   :  { %v683_v59 = vmul.f32 %v1333_v57, %v671_v47  ;;  %vm689_vm1 = vweird.f32 %v1333_v57 }
 0x112   :  { %v677_v0 = vmul.f32 %v1331_v48, %v676_v61  ;;  %vm690_vm4 = vmor %vm688_vm3, %vm689_vm1 }
 0x113   :  { %v684_v60 = vmul.f32 %v1333_v57, %v683_v59 }
 0x114   :  { %v681_v6 = vsel %vm680_vm7, %v1331_v48, %v677_v0 }
 0x115   :  { %v685_v62 = vmul.f32 0.5, %v684_v60 }
 0x117   :  { %v686_v63 = vsub.f32 1.5, %v685_v62 }
 0x119   :  { %v687_v2 = vmul.f32 %v1333_v57, %v686_v63 }
 0x11b   :  { %v691_v3 = vsel %vm690_vm4, %v1333_v57, %v687_v2 }
 0x11c   :  { %v694_v5 = vrot.slane %v691_v3, 7 }
 0x11e   :  { %v696_v7 = vsel %vm695_vm6, %v681_v6, %v694_v5 }
 0x11f   :  { %v698_v8 = vmul.f32 %v696_v7, %v669_v4 }
 0x121   :  { %v701_v9 = vperm.slane %v698_v8, 0  ;;  %v702_v11 = vperm.slane %v698_v8, 1 }
 0x123   :  { %v706_v12 = vmul.f32 %v702_v11, %v1492_v10  ;;  %v705_v14 = vmul.f32 %v701_v9, %v1486_v1  ;;  %v716_v18 = vmul.f32 %v702_v11, %v1480_v53  ;;  %v713_v19 = vmul.f32 %v701_v9, %v1476_v44  ;;  %v1329_v44 = vld [vmem:[%s1575_s8] ss:$0 sm:$0xff] }
 0x124   :  { %v715_v21 = vmul.f32 %v701_v9, %v1474_v42  ;;  %v714_v23 = vmul.f32 %v702_v11, %v1482_v54 }
 0x125   :  { %v709_v15 = vrot.slane %v706_v12, 7 }
 0x127   :  { %v710_v16 = vsel %vm695_vm6, %v705_v14, %v709_v15 }
 0x128   :  { %v712_v17 = vsub.f32 %v699_v13, %v710_v16 }
 0x12a   :  { %v719_v20 = vperm.slane %v712_v17, 1  ;;  %v718_v22 = vperm.slane %v712_v17, 0 }
 0x12c   :  { %v725_v10 = vadd.f32 %v719_v20, %v716_v18  ;;  %v722_v24 = vadd.f32 %v718_v22, %v713_v19  ;;  %v724_v25 = vadd.f32 %v718_v22, %v715_v21  ;;  %v723_v26 = vadd.f32 %v719_v20, %v714_v23 }
 0x12e   :  { %v726_v27 = vmax.f32 %v722_v24, 0.0  ;;  %v728_v28 = vmax.f32 %v724_v25, 0.0  ;;  %v727_v1 = vmax.f32 %v723_v26, 0.0  ;;  %v729_v29 = vmax.f32 %v725_v10, 0.0 }
 0x130   :  { %v730_v30 = vpack.c.bf16 %v728_v28, %v726_v27  ;;  %v731_v31 = vpack.c.bf16 %v729_v29, %v727_v1 }
 0x132   :  { %872 = vmatmul.bf16.vlgmr.msra.gmra.mxu0 %v730_v30  ;;  %886 = vmatmul.bf16.vlgmr.msra.gmra.mxu1 %v731_v31 }
 0x1af   :  { %v873_v42 = vpop.f32.mrf.mxu0  ;;  %v887_v53 = vpop.f32.mrf.mxu1 }
 0x1b0   :  { %v874_v32 = vadd.f32 %v1329_v44, %v873_v42 }
 0x1b2   :  { %v888_v54 = vadd.f32 %v887_v53, %v874_v32 }
 0x1b4   :  { %893 = vst.msk [vmem:[%s1576_s9] sm:$0xff] %vm892_vm8, %v888_v54 }
 0x1b7   :  { %v875_v33 = vpop.f32.mrf.mxu0  ;;  %v889_v35 = vpop.f32.mrf.mxu1 }
 0x1b8   :  { %v876_v34 = vadd.f32 %v1329_v44, %v875_v33 }
 0x1ba   :  { %v890_v36 = vadd.f32 %v889_v35, %v876_v34 }
 0x1bc   :  { %894 = vst.msk [vmem:[%s1576_s9 + $0x8] sm:$0xff] %vm892_vm8, %v890_v36 }
 0x1bd   :  { %899 = vsyncpa [#allocation4], 1 }
 0x1be   :  { %900 = vsyncpa [#allocation6], 1 }

</bundles_post_ra>
